<compile_context>
chip_gen: v5e
topology: v5e:2x2
jax: 0.10.0
libtpu: 0.0.40
codegen_flags: <defaults>
</compile_context>

<pallas_src>
import math

import jax
import jax.numpy as jnp
from jax import lax
from jax.experimental import pallas as pl
from jax.experimental.pallas import tpu as pltpu


def cnn_dim_out(in_size, ker, stride, padding):
    return math.floor((in_size - ker + 2 * padding) / stride) + 1


# ----------------------------------------------------------------------------
# Fused Pallas kernel: per grid step k
#   R_k   = A @ weights[k]^T                      (B*I*4, D)
#   acc  += W2big[k] @ R_k                        (B*O*4, D)   (f32, in VMEM)
# and at the last step:  out = acc + bias.
# ----------------------------------------------------------------------------
def _fused_gconv_kernel(a_ref, w_ref, w2_ref, bias_ref, o_ref, acc_ref):
    # a_ref    : (B*I*4, M)      resident (same block every step -> fetched once)
    # w_ref    : (1, D, M)       weights[k]  (streamed / double-buffered)
    # w2_ref   : (1, B*Q, B*P)   block-diag folded mtx2_temp[..., k]
    # bias_ref : (B*Q, 1)        per-row conv bias (resident)
    # o_ref    : (B*Q, D)        output (resident; one HBM writeback at end)
    # acc_ref  : (B*Q, D) f32    VMEM accumulator scratch
    k = pl.program_id(0)

    @pl.when(k == 0)
    def _():
        acc_ref[...] = jnp.zeros_like(acc_ref)

    # R[(b,i,s), d] = sum_m a[(b,i,s), m] * weights[k, d, m]
    # (contraction over the LAST dim of both operands: transposed-RHS matmul,
    #  consumed natively by the MXU -> no HBM/VMEM transpose of weights).
    r = lax.dot_general(
        a_ref[...], w_ref[0],
        dimension_numbers=(((1,), (1,)), ((), ())),
        preferred_element_type=jnp.float32)

    # acc[(b,o,t), d] += sum_{(b',i,s)} W2big[(b,o,t),(b',i,s)] * R[(b',i,s), d]
    acc_ref[...] += jnp.dot(w2_ref[0], r, preferred_element_type=jnp.float32)

    @pl.when(k == pl.num_programs(0) - 1)
    def _():
        o_ref[...] = (acc_ref[...] + bias_ref[...]).astype(o_ref.dtype)


# ----------------------------------------------------------------------------
# Forward pass (mirrors Fast_MLPGConv_P4.forward exactly)
# ----------------------------------------------------------------------------
def fast_mlp_gconv_p4_forward(img, params):
    conv_w = params["conv_w"]              # (O, I, 4, ks, ks)
    conv_b = params["conv_b"]              # (O,)
    mtx1 = params["mtx1"]                  # (ks^2, M1)
    mtx2 = params["mtx2"]                  # (ks^2 * M1, K)
    weights = params["weights"]            # (K, D, M)   D = od^2, M = img_dim^2
    cparams = params["cparams_transform"]  # (16, 4, ks^2, ks^2)

    B, I, S, H, W = img.shape
    O, I2, _, ks, _ = conv_w.shape
    K, D, M = weights.shape
    assert S == 4 and I2 == I and M == H * W
    P = ks * ks
    BP = B * I * 4          # rows of the first matmul, order (b, i, s)
    BQ = B * O * 4          # rows of the accumulator,  order (b, o, t)

    # A: natural contiguous flattening of img -> (B*I*4, M). No transpose.
    a_mat = img.reshape(BP, M)

    # --- tiny filter-transform pipeline (plain JAX glue, negligible) ---
    conv_flat = conv_w.reshape(O, I, 4, P)
    cp = jnp.einsum('cbij,mnbj->mncbi', cparams, conv_flat).sum(axis=3)
    cp = cp.reshape(O, I, 4, 4, P)
    m1t = (mtx1.reshape(1, 1, 1, 1, P, -1) * cp[..., None]).reshape(O, I, 4, 4, -1)
    m2t = m1t @ mtx2                                        # (O, I, 4, 4, K)

    # W2[k, (o,t), (i,s)] = mtx2_temp[o, i, t, s, k]   (tiny)
    w2 = m2t.transpose(4, 0, 2, 1, 3).reshape(K, O * 4, I * 4)
    # Block-diagonal fold over the batch: W2big[k, (b,q), (b',p)] = delta_bb' * W2[k,q,p].
    # This keeps BOTH in-kernel contractions plain 2-D matmuls with zero
    # reshapes/transposes and makes the output rows already (b, o, t)-ordered.
    eye_b = jnp.eye(B, dtype=w2.dtype)
    w2big = jnp.einsum('bc,kqp->kbqcp', eye_b, w2).reshape(K, BQ, BP)

    # Per-row bias in (b, o, t) order, added in the kernel epilogue.
    bias_col = jnp.tile(jnp.repeat(conv_b, 4), B).reshape(BQ, 1)

    flops = 2 * K * (BP * M * D + BQ * BP * D)
    bytes_accessed = 4 * (BP * M + K * D * M + K * BQ * BP + BQ + BQ * D)

    out2d = pl.pallas_call(
        _fused_gconv_kernel,
        out_shape=jax.ShapeDtypeStruct((BQ, D), jnp.float32),
        grid_spec=pltpu.PrefetchScalarGridSpec(
            num_scalar_prefetch=0,
            grid=(K,),                                     # reduction over weight blocks
            in_specs=[
                pl.BlockSpec((BP, M), lambda k: (0, 0)),         # A (resident)
                pl.BlockSpec((1, D, M), lambda k: (k, 0, 0)),    # weights[k] (streamed)
                pl.BlockSpec((1, BQ, BP), lambda k: (k, 0, 0)),  # W2big[k]   (streamed)
                pl.BlockSpec((BQ, 1), lambda k: (0, 0)),         # bias (resident)
            ],
            out_specs=pl.BlockSpec((BQ, D), lambda k: (0, 0)),   # resident output
            scratch_shapes=[pltpu.VMEM((BQ, D), jnp.float32)],   # f32 accumulator
        ),
        compiler_params=pltpu.CompilerParams(
            dimension_semantics=("arbitrary",),        # K is a reduction axis
            vmem_limit_bytes=32 * 1024 * 1024,         # explicit bound (v7x-safe)
        ),
        cost_estimate=pl.CostEstimate(
            flops=flops, transcendentals=0, bytes_accessed=bytes_accessed),
    )(a_mat, weights, w2big, bias_col)

    od = int(round(math.sqrt(D)))
    # Rows are already (b, o, t)-ordered -> pure reshape, no transpose.
    return out2d.reshape(B, O, 4, od, od)


# ----------------------------------------------------------------------------
# Pure-JAX reference (direct transcription of the PyTorch forward)
# ----------------------------------------------------------------------------
def reference_forward(img, params):
    conv_w, conv_b = params["conv_w"], params["conv_b"]
    mtx1, mtx2 = params["mtx1"], params["mtx2"]
    weights, cparams = params["weights"], params["cparams_transform"]
    B, I, S, H, W = img.shape
    O, _, _, ks, _ = conv_w.shape
    imgf = img.reshape(B, I, S, H * W)
    convf = conv_w.reshape(O, I, 4, ks * ks)
    result = jnp.einsum('bism,kdm->kbisd', imgf, weights)
    cp = jnp.einsum('cbij,mnbj->mncbi', cparams, convf).sum(axis=3)
    cp = cp.reshape(O, I, 4, 4, ks * ks)
    m1t = (mtx1.reshape(1, 1, 1, 1, ks * ks, -1) * cp[..., None]).reshape(O, I, 4, 4, -1)
    m2t = m1t @ mtx2
    out = jnp.einsum('oitsk,kbisd->botd', m2t, result) + conv_b.reshape(1, O, 1, 1)
    od = int(round(math.sqrt(out.shape[-1])))
    return out.reshape(-1, O, 4, od, od)


if __name__ == "__main__":
    # Small, self-consistent shapes.
    B, ch_in, ch_out = 2, 4, 4
    img_dim, ks = 16, 3
    blocks_K, M1 = 8, 4
    od = cnn_dim_out(img_dim, ks, 1, 0)      # 14
    M = img_dim * img_dim                    # 256
    D = od * od                              # 196
    P = ks * ks                              # 9

    key = jax.random.PRNGKey(0)
    k = jax.random.split(key, 7)

    img = jax.random.normal(k[0], (B, ch_in, 4, img_dim, img_dim), jnp.float32)

    # Deterministic parameter init (shapes from the module's __init__ / forward).
    fan_in = ch_in * 4 * ks * ks
    bound = 1.0 / math.sqrt(fan_in)
    params = dict(
        conv_w=jax.random.uniform(k[1], (ch_out, ch_in, 4, ks, ks),
                                  jnp.float32, -bound, bound),
        conv_b=jax.random.uniform(k[2], (ch_out,), jnp.float32, -bound, bound),
        mtx1=0.1 * jax.random.normal(k[3], (P, M1), jnp.float32),
        mtx2=0.1 * jax.random.normal(k[4], (P * M1, blocks_K), jnp.float32),
        weights=0.05 * jax.random.normal(k[5], (blocks_K, D, M), jnp.float32),
        cparams_transform=0.1 * jax.random.normal(k[6], (16, 4, P, P), jnp.float32),
    )

    out = jax.jit(fast_mlp_gconv_p4_forward)(img, params)
    out = jax.block_until_ready(out)

    ref = reference_forward(img, params)
    assert out.shape == (B, ch_out, 4, od, od), out.shape
    assert jnp.allclose(out, ref, rtol=1e-4, atol=1e-4), \
        float(jnp.max(jnp.abs(out - ref)))
    print("KERNEL_OK")
</pallas_src>

<mosaic_0001>
module attributes {stable_mosaic.version = 11 : i64} {
  func.func @_fused_gconv_kernel(%arg0: i32, %arg1: memref<32x256xf32, #tpu.memory_space<vmem>>, %arg2: memref<1x196x256xf32, #tpu.memory_space<vmem>>, %arg3: memref<1x32x32xf32, #tpu.memory_space<vmem>>, %arg4: memref<32x1xf32, #tpu.memory_space<vmem>>, %arg5: memref<32x196xf32, #tpu.memory_space<vmem>>, %arg6: memref<32x196xf32, #tpu.memory_space<vmem>>) attributes {dimension_semantics = [#tpu.dimension_semantics<arbitrary>], iteration_bounds = array<i64: 8>, scalar_prefetch = 0 : i64, scratch_operands = 1 : i64, tpu.core_type = #tpu.core_type<tc>, window_params = [{pipeline_mode = #tpu.pipeline_mode<synchronous>, transform_indices = @transform_0, window_bounds = array<i64: 32, 256>}, {transform_indices = @transform_1, window_bounds = array<i64: 1, 196, 256>}, {transform_indices = @transform_2, window_bounds = array<i64: 1, 32, 32>}, {pipeline_mode = #tpu.pipeline_mode<synchronous>, transform_indices = @transform_3, window_bounds = array<i64: 32, 1>}, {pipeline_mode = #tpu.pipeline_mode<synchronous>, transform_indices = @transform_4, window_bounds = array<i64: 32, 196>}]} {
    %c0_i32 = arith.constant 0 : i32
    %0 = arith.cmpi eq, %arg0, %c0_i32 : i32
    %1 = arith.extui %0 : i1 to i32
    %c0_i32_0 = arith.constant 0 : i32
    %2 = arith.cmpi ne, %1, %c0_i32_0 : i32
    scf.if %2 {
      %cst_14 = arith.constant 0.000000e+00 : f32
      %16 = vector.broadcast %cst_14 : f32 to vector<32x196xf32>
      %c0_15 = arith.constant 0 : index
      %c0_16 = arith.constant 0 : index
      %17 = vector.load %arg6[%c0_15, %c0_16] : memref<32x196xf32, #tpu.memory_space<vmem>>, vector<32x196xf32>
      tpu.vector_store %arg6[%c0_15, %c0_16], %16 {strides = array<i32>} : memref<32x196xf32, #tpu.memory_space<vmem>>, vector<32x196xf32>,
    } else {
    }
    %c0 = arith.constant 0 : index
    %c0_1 = arith.constant 0 : index
    %3 = vector.load %arg1[%c0, %c0_1] : memref<32x256xf32, #tpu.memory_space<vmem>>, vector<32x256xf32>
    %c0_2 = arith.constant 0 : index
    %c0_3 = arith.constant 0 : index
    %c0_4 = arith.constant 0 : index
    %4 = vector.load %arg2[%c0_2, %c0_3, %c0_4] : memref<1x196x256xf32, #tpu.memory_space<vmem>>, vector<1x196x256xf32>
    %5 = vector.shape_cast %4 : vector<1x196x256xf32> to vector<196x256xf32>
    %cst = arith.constant dense<0.000000e+00> : vector<32x196xf32>
    %6 = tpu.matmul %3, %5, %cst {dimension_numbers = #tpu.dot_dimension_numbers<[1], [1], [0], [0], [0, 0, 1, 0], [], []>} : vector<32x256xf32>, vector<196x256xf32>, vector<32x196xf32> -> vector<32x196xf32>
    %c0_5 = arith.constant 0 : index
    %c0_6 = arith.constant 0 : index
    %7 = vector.load %arg6[%c0_5, %c0_6] : memref<32x196xf32, #tpu.memory_space<vmem>>, vector<32x196xf32>
    %c0_7 = arith.constant 0 : index
    %c0_8 = arith.constant 0 : index
    %c0_9 = arith.constant 0 : index
    %8 = vector.load %arg3[%c0_7, %c0_8, %c0_9] : memref<1x32x32xf32, #tpu.memory_space<vmem>>, vector<1x32x32xf32>
    %9 = vector.shape_cast %8 : vector<1x32x32xf32> to vector<32x32xf32>
    %cst_10 = arith.constant dense<0.000000e+00> : vector<32x196xf32>
    %10 = tpu.matmul %9, %6, %cst_10 {dimension_numbers = #tpu.dot_dimension_numbers<[1], [0], [0], [1], [0, 0, 1, 1], [], []>} : vector<32x32xf32>, vector<32x196xf32>, vector<32x196xf32> -> vector<32x196xf32>
    %11 = arith.addf %7, %10 : vector<32x196xf32>
    %c0_11 = arith.constant 0 : index
    %c0_12 = arith.constant 0 : index
    %12 = vector.load %arg6[%c0_11, %c0_12] : memref<32x196xf32, #tpu.memory_space<vmem>>, vector<32x196xf32>
    tpu.vector_store %arg6[%c0_11, %c0_12], %11 {strides = array<i32>} : memref<32x196xf32, #tpu.memory_space<vmem>>, vector<32x196xf32>,
    %c7_i32 = arith.constant 7 : i32
    %13 = arith.cmpi eq, %arg0, %c7_i32 : i32
    %14 = arith.extui %13 : i1 to i32
    %c0_i32_13 = arith.constant 0 : i32
    %15 = arith.cmpi ne, %14, %c0_i32_13 : i32
    scf.if %15 {
      %c0_14 = arith.constant 0 : index
      %c0_15 = arith.constant 0 : index
      %16 = vector.load %arg6[%c0_14, %c0_15] : memref<32x196xf32, #tpu.memory_space<vmem>>, vector<32x196xf32>
      %c0_16 = arith.constant 0 : index
      %c0_17 = arith.constant 0 : index
      %17 = vector.load %arg4[%c0_16, %c0_17] : memref<32x1xf32, #tpu.memory_space<vmem>>, vector<32x1xf32>
      %18 = vector.broadcast %17 : vector<32x1xf32> to vector<32x196xf32>
      %19 = arith.addf %16, %18 : vector<32x196xf32>
      %c0_18 = arith.constant 0 : index
      %c0_19 = arith.constant 0 : index
      %20 = vector.load %arg5[%c0_18, %c0_19] : memref<32x196xf32, #tpu.memory_space<vmem>>, vector<32x196xf32>
      tpu.vector_store %arg5[%c0_18, %c0_19], %19 {strides = array<i32>} : memref<32x196xf32, #tpu.memory_space<vmem>>, vector<32x196xf32>,
    } else {
    }
    return
  }
  func.func @transform_0(%arg0: i32) -> (i32, i32) {
    %c0_i32 = arith.constant 0 : i32
    %c0_i32_0 = arith.constant 0 : i32
    %c0_i32_1 = arith.constant 0 : i32
    return %c0_i32, %c0_i32_0 : i32, i32
  }
  func.func @transform_1(%arg0: i32) -> (i32, i32, i32) {
    %c0_i32 = arith.constant 0 : i32
    %c0_i32_0 = arith.constant 0 : i32
    %c0_i32_1 = arith.constant 0 : i32
    return %arg0, %c0_i32, %c0_i32_0 : i32, i32, i32
  }
  func.func @transform_2(%arg0: i32) -> (i32, i32, i32) {
    %c0_i32 = arith.constant 0 : i32
    %c0_i32_0 = arith.constant 0 : i32
    %c0_i32_1 = arith.constant 0 : i32
    return %arg0, %c0_i32, %c0_i32_0 : i32, i32, i32
  }
  func.func @transform_3(%arg0: i32) -> (i32, i32) {
    %c0_i32 = arith.constant 0 : i32
    %c0_i32_0 = arith.constant 0 : i32
    %c0_i32_1 = arith.constant 0 : i32
    return %c0_i32, %c0_i32_0 : i32, i32
  }
  func.func @transform_4(%arg0: i32) -> (i32, i32) {
    %c0_i32 = arith.constant 0 : i32
    %c0_i32_0 = arith.constant 0 : i32
    %c0_i32_1 = arith.constant 0 : i32
    return %c0_i32, %c0_i32_0 : i32, i32
  }
}

</mosaic_0001>

<bundles_post_ra>
// kernel: tile.5
= control target key start
LH: loop header
LB: loop body
LE: loop exit
PB: predicated region body
PF: predicated region fallthrough
CT: control target
= control target key end

     0   :  { %s37_s8 = smov 4   ;;  %s38_s9 = smov 8   ;;  %vm7_vm0 = vcmask 31744   ;;  %vm13_vm1 = vcmask 130144   ;;  %vm19_vm2 = vcmask 97344   ;;  %vm25_vm3 = vcmask 64544   ;;  %s55_s0 = inlined_call_operand.vmem [shape: f32[4,4], index: 0, kind: input, shape index: {}]   ;;  %s56_s1 = inlined_call_operand.vmem [shape: f32[16], index: 1, kind: output, shape index: {}]  }
   0x1   :  { %v4_v0 = vld [vmem:[%s55_s0] sm:$0xf]  ;;  %s36_s0 = smov 12  }
   0x2   :  { %5 = vst [vmem:[#allocation1] sm:$0xf] %v4_v0 }
   0x9   :  { %v10_v1 = vld [vmem:[#allocation1 + $0x3] sm:$0x1]   ;;  %v22_v2 = vld [vmem:[#allocation1 + $0x1] sm:$0x1]   ;;  %v16_v3 = vld [vmem:[#allocation1 + $0x2] sm:$0x1]  }
   0xa   :  { %11 = vrot.lane.b32.xlu0 %v10_v1, %s36_s0  ;;  %23 = vrot.lane.b32.xlu1 %v22_v2, %s37_s8  ;;  %v6_v4 = vld [vmem:[#allocation1] sm:$0x1]  }
   0xb   :  { %8 = vst.msk [vmem:[#allocation0] sm:$0x1] %vm7_vm0, %v6_v4  }
  0x12   :  { %17 = vrot.lane.b32.xlu0 %v16_v3, %s38_s9 }
  0x7c   :  { %v12_v5 = vpop.permute.xlu0 %11   ;;  %v24_v6 = vpop.permute.xlu1 %23  }
  0x7d   :  { %14 = vst.msk [vmem:[#allocation0] sm:$0x1] %vm13_vm1, %v12_v5  }
  0x84   :  { %v18_v7 = vpop.permute.xlu0 %17  }
  0x85   :  { %20 = vst.msk [vmem:[#allocation0] sm:$0x1] %vm19_vm2, %v18_v7  }
  0x86   :  { %26 = vst.msk [vmem:[#allocation0] sm:$0x1] %vm25_vm3, %v24_v6  }
  0x8d   :  { %v29_v8 = vld [vmem:[#allocation0] sm:$0x1] }
  0x8e   :  { %32 = vst [vmem:[%s56_s1] sm:$0x1] %v29_v8 }

// kernel: tile.6
= control target key start
LH: loop header
LB: loop body
LE: loop exit
PB: predicated region body
PF: predicated region fallthrough
CT: control target
= control target key end

     0   :  { %s22_s0 = inlined_call_operand.vmem [shape: f32[16], index: 0, kind: input, shape index: {}]   ;;  %s23_s1 = inlined_call_operand.vmem [shape: f32[2,16], index: 1, kind: output, shape index: {}]  }
   0x1   :  { %v4_v0 = vld [vmem:[%s22_s0] ss:$0 sm:$0xff] }
   0x2   :  { %5 = vst [vmem:[%s23_s1] sm:$0x3] %v4_v0 }

// kernel: tile.0
= control target key start
LH: loop header
LB: loop body
LE: loop exit
PB: predicated region body
PF: predicated region fallthrough
CT: control target
= control target key end

     0   :  { %s130_s8 = smov 127   ;;  %s131_s9 = smov 123   ;;  %vm7_vm0 = vcmask 7168   ;;  %s221_s0 = inlined_call_operand.vmem [shape: f32[2,16], index: 0, kind: input, shape index: {}]   ;;  %s222_s1 = inlined_call_operand.vmem [shape: f32[32,1], index: 1, kind: output, shape index: {}]  }
   0x1   :  { %v4_v0 = vld [vmem:[%s221_s0] sm:$0x3]  ;;  %s129_s0 = smov 125   ;;  %s132_s10 = smov 124  }
   0x2   :  { %5 = vst [vmem:[#allocation0] sm:$0x3] %v4_v0  ;;  %s133_s11 = smov 126   ;;  %s134_s12 = smov 122  }
   0x3   :  { %s135_s13 = smov 120   ;;  %s136_s14 = smov 121  }
   0x4   :  { %s137_s15 = smov 119   ;;  %s138_s16 = smov 117  }
   0x5   :  { %s139_s17 = smov 118   ;;  %s140_s18 = smov 116  }
   0x6   :  { %s141_s19 = smov 114   ;;  %s142_s20 = smov 115  }
   0x7   :  { %s143_s21 = smov 113  }
   0x9   :  { %v21_v1 = vld [vmem:[#allocation0] sm:$0x3]  }
   0xa   :  { %v9_v2 = vld [vmem:[#allocation0] sm:$0x3]   ;;  %22 = vrot.lane.b32.xlu1 %v21_v1, %s129_s0 }
   0xb   :  { %10 = vrot.lane.b32.xlu0 %v9_v2, %s130_s8  ;;  %v33_v3 = vld [vmem:[#allocation0] sm:$0x3]  }
   0xc   :  { %34 = vrot.lane.b32.xlu2 %v33_v3, %s131_s9  ;;  %v27_v4 = vld [vmem:[#allocation0] sm:$0x3]  }
   0xd   :  { %v15_v5 = vld [vmem:[#allocation0] sm:$0x3]  }
   0xe   :  { %v39_v6 = vld [vmem:[#allocation0] sm:$0x3]  }
   0xf   :  { %v51_v7 = vld [vmem:[#allocation0] sm:$0x3]  }
  0x10   :  { %v45_v8 = vld [vmem:[#allocation0] sm:$0x3]  }
  0x11   :  { %v57_v9 = vld [vmem:[#allocation0] sm:$0x3]  }
  0x12   :  { %28 = vrot.lane.b32.xlu1 %v27_v4, %s132_s10  ;;  %v69_v10 = vld [vmem:[#allocation0] sm:$0x3]  }
  0x13   :  { %16 = vrot.lane.b32.xlu0 %v15_v5, %s133_s11  ;;  %v63_v11 = vld [vmem:[#allocation0] sm:$0x3]  }
  0x14   :  { %40 = vrot.lane.b32.xlu2 %v39_v6, %s134_s12  ;;  %v75_v12 = vld [vmem:[#allocation0] sm:$0x3]  }
  0x15   :  { %v87_v13 = vld [vmem:[#allocation0] sm:$0x3]  }
  0x16   :  { %v81_v14 = vld [vmem:[#allocation0] sm:$0x3]  }
  0x17   :  { %v93_v15 = vld [vmem:[#allocation0] sm:$0x3]  }
  0x18   :  { %v6_v21 = vld [vmem:[#allocation0] sm:$0x3]  }
  0x19   :  { %8 = vst.msk [vmem:[%s222_s1] ss:$16 sm:$0x3] %vm7_vm0, %v6_v21  }
  0x1a   :  { %52 = vrot.lane.b32.xlu1 %v51_v7, %s135_s13 }
  0x1b   :  { %46 = vrot.lane.b32.xlu0 %v45_v8, %s136_s14 }
  0x1c   :  { %58 = vrot.lane.b32.xlu2 %v57_v9, %s137_s15 }
  0x22   :  { %70 = vrot.lane.b32.xlu1 %v69_v10, %s138_s16 }
  0x23   :  { %64 = vrot.lane.b32.xlu0 %v63_v11, %s139_s17 }
  0x24   :  { %76 = vrot.lane.b32.xlu2 %v75_v12, %s140_s18 }
  0x2a   :  { %88 = vrot.lane.b32.xlu1 %v87_v13, %s141_s19 }
  0x2b   :  { %82 = vrot.lane.b32.xlu0 %v81_v14, %s142_s20 }
  0x2c   :  { %94 = vrot.lane.b32.xlu2 %v93_v15, %s143_s21 }
  0x66   :  { %v35_v16 = vpop.permute.xlu2 %34  }
  0x67   :  { %103 = vst.msk [vmem:[%s222_s1 + $0x5] ss:$16 sm:$0x3] %vm7_vm0, %v35_v16  }
  0x6e   :  { %v41_v17 = vpop.permute.xlu2 %40  }
  0x6f   :  { %104 = vst.msk [vmem:[%s222_s1 + $0x6] ss:$16 sm:$0x3] %vm7_vm0, %v41_v17  }
  0x76   :  { %v59_v18 = vpop.permute.xlu2 %58  }
  0x77   :  { %107 = vst.msk [vmem:[%s222_s1 + $0x9] ss:$16 sm:$0x3] %vm7_vm0, %v59_v18  }
  0x7c   :  { %v23_v19 = vpop.permute.xlu1 %22  }
  0x7d   :  { %v11_v20 = vpop.permute.xlu0 %10   ;;  %101 = vst.msk [vmem:[%s222_s1 + $0x3] ss:$16 sm:$0x3] %vm7_vm0, %v23_v19  }
  0x7e   :  { %99 = vst.msk [vmem:[%s222_s1 + $0x1] ss:$16 sm:$0x3] %vm7_vm0, %v11_v20   ;;  %v77_v22 = vpop.permute.xlu2 %76  }
  0x7f   :  { %110 = vst.msk [vmem:[%s222_s1 + $0xc] ss:$16 sm:$0x3] %vm7_vm0, %v77_v22  }
  0x84   :  { %v29_v23 = vpop.permute.xlu1 %28  }
  0x85   :  { %v17_v24 = vpop.permute.xlu0 %16   ;;  %102 = vst.msk [vmem:[%s222_s1 + $0x4] ss:$16 sm:$0x3] %vm7_vm0, %v29_v23  }
  0x86   :  { %100 = vst.msk [vmem:[%s222_s1 + $0x2] ss:$16 sm:$0x3] %vm7_vm0, %v17_v24   ;;  %v95_v25 = vpop.permute.xlu2 %94  }
  0x87   :  { %113 = vst.msk [vmem:[%s222_s1 + $0xf] ss:$16 sm:$0x3] %vm7_vm0, %v95_v25  }
  0x8c   :  { %v53_v26 = vpop.permute.xlu1 %52  }
  0x8d   :  { %v47_v27 = vpop.permute.xlu0 %46   ;;  %106 = vst.msk [vmem:[%s222_s1 + $0x8] ss:$16 sm:$0x3] %vm7_vm0, %v53_v26  }
  0x8e   :  { %105 = vst.msk [vmem:[%s222_s1 + $0x7] ss:$16 sm:$0x3] %vm7_vm0, %v47_v27  }
  0x94   :  { %v71_v28 = vpop.permute.xlu1 %70  }
  0x95   :  { %v65_v29 = vpop.permute.xlu0 %64   ;;  %109 = vst.msk [vmem:[%s222_s1 + $0xb] ss:$16 sm:$0x3] %vm7_vm0, %v71_v28  }
  0x96   :  { %108 = vst.msk [vmem:[%s222_s1 + $0xa] ss:$16 sm:$0x3] %vm7_vm0, %v65_v29  }
  0x9c   :  { %v89_v30 = vpop.permute.xlu1 %88  }
  0x9d   :  { %v83_v31 = vpop.permute.xlu0 %82   ;;  %112 = vst.msk [vmem:[%s222_s1 + $0xe] ss:$16 sm:$0x3] %vm7_vm0, %v89_v30  }
  0x9e   :  { %111 = vst.msk [vmem:[%s222_s1 + $0xd] ss:$16 sm:$0x3] %vm7_vm0, %v83_v31  }

// kernel: fast_mlp_gconv_p4_forward.1
= control target key start
LH: loop header
LB: loop body
LE: loop exit
PB: predicated region body
PF: predicated region fallthrough
CT: control target
= control target key end

     0   :  { %s650_s15 = smov 0   ;;  %s807_s0 = inlined_call_operand.vmem [shape: f32[32,256], index: 0, kind: input, shape index: {}]   ;;  %s808_s1 = inlined_call_operand.vmem [shape: f32[8,196,256], index: 1, kind: input, shape index: {}]   ;;  %s809_s2 = inlined_call_operand.vmem [shape: f32[8,32,32], index: 2, kind: input, shape index: {}]   ;;  %s810_s3 = inlined_call_operand.vmem [shape: f32[32,1], index: 3, kind: input, shape index: {}]   ;;  %s811_s4 = inlined_call_operand.vmem [shape: f32[32,196], index: 4, kind: output, shape index: {}]  }
   0x1 LB: > { %s656_s16 = sadd.s32 4294967295, %s621_s15   ;;  %p585_p0 = scmp.ge.s32.totalorder %s621_s15, 1  ;;  %s621_s15 = sphi %s650_s15, %s14_s15  }
   0x2   : > { %p167_p1 = scmp.lt.s32.totalorder %s621_s15, 9 }
   0x4   : > { %p168_p2 = pnand %p585_p0, %p167_p1 }
   0x5   : > { %p193_p3 = scmp.lt.s32.totalorder (!%p168_p2), %s656_s16, 7  ;;  %p589_p4 = scmp.ne.s32.totalorder (!%p168_p2), %s656_s16, 0 }
   0x6   : > { %171 = sbr.rel (%p168_p2) target bundleno = 540 (0x21c), region = 36 }
   0xb   : > { %s194_s17 = scalar_select %p193_p3, %s656_s16, 7 }
   0xc   : > { %206 = sbr.rel (%p589_p4) target bundleno = 26 (0x1a), region = 40 }
   0xd   : > { %s602_s18 = smul.u32 400, %s194_s17  ;;  %s601_s19 = sshll.u32 %s194_s17, 5 }
   0xe   : > { %s665_s22 = scalar_lea.vmem %s809_s2, %s601_s19 }
   0xf   : > { %s670_s25 = scalar_lea.vmem %s808_s1, %s602_s18 }
  0x11   : > { %v623_v0 = vmov 0.0   ;;  %vm208_vm0 = vcmask 556032  }
  0x12   : > { %207 = vst [vmem:[#allocation2] sm:$0xff] %v623_v0 }
  0x13   : > { %210 = vst [vmem:[#allocation2 + $0x10] sm:$0xff] %v623_v0 }
  0x14   : > { %212 = vst [vmem:[#allocation2 + $0x20] sm:$0xff] %v623_v0 }
  0x15   : > { %214 = vst [vmem:[#allocation2 + $0x30] sm:$0xff] %v623_v0 }
  0x16   : > { %209 = vst.msk [vmem:[#allocation2 + $0x8] sm:$0xff] %vm208_vm0, %v623_v0 }
  0x17   : > { %211 = vst.msk [vmem:[#allocation2 + $0x18] sm:$0xff] %vm208_vm0, %v623_v0 }
  0x18   : > { %213 = vst.msk [vmem:[#allocation2 + $0x28] sm:$0xff] %vm208_vm0, %v623_v0 }
  0x19   : > { %215 = vst.msk [vmem:[#allocation2 + $0x38] sm:$0xff] %vm208_vm0, %v623_v0 }
  0x1a PF: > { %v254_v1 = vld [vmem:[%s670_s25 + $0xf0] sm:$0xff]  ;;  %v255_v2 = vld [vmem:[%s670_s25 + $0xf8] sm:$0xff]  ;;  %v272_v3 = vld [vmem:[%s670_s25 + $0x180] sm:$0xf]  ;;  %vm402_vm1 = vcmask 261120   ;;  %vm482_vm2 = vcmask 556032  }
  0x1b   : > { %274 = vmatpush.xpose.msra.mxu0 %v254_v1  ;;  %303 = vmatpush.xpose.msra.mxu1 %v255_v2  ;;  %v273_v4 = vld [vmem:[%s670_s25 + $0x188] sm:$0xf]  ;;  %v252_v5 = vld [vmem:[%s670_s25 + $0xe0] sm:$0xff]  ;;  %v270_v7 = vld [vmem:[%s670_s25 + $0x170] sm:$0xff]  ;;  %p598_p5 = scmp.ne.s32.totalorder %s656_s16, 7 }
  0x1c   : > { %339 = vmatpush.xpose.msra.mxu2 %v272_v3  ;;  %368 = vmatpush.xpose.msra.mxu3 %v273_v4  ;;  %v253_v6 = vld [vmem:[%s670_s25 + $0xe8] sm:$0xff]  ;;  %v271_v8 = vld [vmem:[%s670_s25 + $0x178] sm:$0xff]  ;;  %v250_v9 = vld [vmem:[%s670_s25 + $0xd0] sm:$0xff] }
  0x1d   : > { %v251_v10 = vld [vmem:[%s670_s25 + $0xd8] sm:$0xff]  ;;  %v268_v11 = vld [vmem:[%s670_s25 + $0x160] sm:$0xff]  ;;  %v269_v12 = vld [vmem:[%s670_s25 + $0x168] sm:$0xff] }
  0x1e   : > { %v248_v13 = vld [vmem:[%s670_s25 + $0xc0] sm:$0xff]  ;;  %v249_v14 = vld [vmem:[%s670_s25 + $0xc8] sm:$0xff]  ;;  %v266_v15 = vld [vmem:[%s670_s25 + $0x150] sm:$0xff] }
  0x1f   : > { %275 = vmatpush.xpose.msra.mxu0 %v252_v5  ;;  %304 = vmatpush.xpose.msra.mxu1 %v253_v6  ;;  %v267_v16 = vld [vmem:[%s670_s25 + $0x158] sm:$0xff]  ;;  %v246_v17 = vld [vmem:[%s670_s25 + $0xb0] sm:$0xff]  ;;  %v264_v19 = vld [vmem:[%s670_s25 + $0x140] sm:$0xff] }
  0x20   : > { %340 = vmatpush.xpose.msra.mxu2 %v270_v7  ;;  %369 = vmatpush.xpose.msra.mxu3 %v271_v8  ;;  %v247_v18 = vld [vmem:[%s670_s25 + $0xb8] sm:$0xff]  ;;  %v265_v20 = vld [vmem:[%s670_s25 + $0x148] sm:$0xff]  ;;  %v244_v21 = vld [vmem:[%s670_s25 + $0xa0] sm:$0xff] }
  0x21   : > { %v245_v22 = vld [vmem:[%s670_s25 + $0xa8] sm:$0xff]  ;;  %v262_v23 = vld [vmem:[%s670_s25 + $0x130] sm:$0xff]  ;;  %v263_v24 = vld [vmem:[%s670_s25 + $0x138] sm:$0xff] }
  0x22   : > { %v242_v25 = vld [vmem:[%s670_s25 + $0x90] sm:$0xff]  ;;  %v243_v26 = vld [vmem:[%s670_s25 + $0x98] sm:$0xff]  ;;  %v260_v27 = vld [vmem:[%s670_s25 + $0x120] sm:$0xff] }
  0x23   : > { %276 = vmatpush.xpose.msra.mxu0 %v250_v9  ;;  %305 = vmatpush.xpose.msra.mxu1 %v251_v10  ;;  %v261_v28 = vld [vmem:[%s670_s25 + $0x128] sm:$0xff]  ;;  %v240_v29 = vld [vmem:[%s670_s25 + $0x80] sm:$0xff]  ;;  %v258_v31 = vld [vmem:[%s670_s25 + $0x110] sm:$0xff] }
  0x24   : > { %341 = vmatpush.xpose.msra.mxu2 %v268_v11  ;;  %370 = vmatpush.xpose.msra.mxu3 %v269_v12  ;;  %v241_v30 = vld [vmem:[%s670_s25 + $0x88] sm:$0xff]  ;;  %v259_v32 = vld [vmem:[%s670_s25 + $0x118] sm:$0xff]  ;;  %v238_v33 = vld [vmem:[%s670_s25 + $0x70] sm:$0xff] }
  0x25   : > { %v239_v34 = vld [vmem:[%s670_s25 + $0x78] sm:$0xff]  ;;  %v256_v35 = vld [vmem:[%s670_s25 + $0x100] sm:$0xff]  ;;  %v257_v36 = vld [vmem:[%s670_s25 + $0x108] sm:$0xff] }
  0x26   : > { %v216_v37 = vld [vmem:[%s807_s0] sm:$0xff]  ;;  %v217_v38 = vld [vmem:[%s807_s0 + $0x8] sm:$0xff]  ;;  %v234_v41 = vld [vmem:[%s670_s25 + $0x50] sm:$0xff] }
  0x27   : > { %277 = vmatpush.xpose.msra.mxu0 %v248_v13  ;;  %306 = vmatpush.xpose.msra.mxu1 %v249_v14  ;;  %v236_v39 = vld [vmem:[%s670_s25 + $0x60] sm:$0xff]  ;;  %v237_v40 = vld [vmem:[%s670_s25 + $0x68] sm:$0xff]  ;;  %v235_v42 = vld [vmem:[%s670_s25 + $0x58] sm:$0xff] }
  0x28   : > { %342 = vmatpush.xpose.msra.mxu2 %v266_v15  ;;  %371 = vmatpush.xpose.msra.mxu3 %v267_v16  ;;  %v218_v43 = vld [vmem:[%s807_s0 + $0x10] sm:$0xff]  ;;  %v219_v44 = vld [vmem:[%s807_s0 + $0x18] sm:$0xff]  ;;  %v232_v45 = vld [vmem:[%s670_s25 + $0x40] sm:$0xff] }
  0x29   : > { %v233_v46 = vld [vmem:[%s670_s25 + $0x48] sm:$0xff]  ;;  %v230_v47 = vld [vmem:[%s670_s25 + $0x30] sm:$0xff]  ;;  %v231_v48 = vld [vmem:[%s670_s25 + $0x38] sm:$0xff] }
  0x2a   : > { %v220_v49 = vld [vmem:[%s807_s0 + $0x20] sm:$0xff]  ;;  %v221_v50 = vld [vmem:[%s807_s0 + $0x28] sm:$0xff]  ;;  %v226_v53 = vld [vmem:[%s670_s25 + $0x10] sm:$0xff] }
  0x2b   : > { %278 = vmatpush.xpose.msra.mxu0 %v246_v17  ;;  %307 = vmatpush.xpose.msra.mxu1 %v247_v18  ;;  %v228_v51 = vld [vmem:[%s670_s25 + $0x20] sm:$0xff]  ;;  %v229_v52 = vld [vmem:[%s670_s25 + $0x28] sm:$0xff]  ;;  %v227_v54 = vld [vmem:[%s670_s25 + $0x18] sm:$0xff] }
  0x2c   : > { %343 = vmatpush.xpose.msra.mxu2 %v264_v19  ;;  %372 = vmatpush.xpose.msra.mxu3 %v265_v20  ;;  %v222_v55 = vld [vmem:[%s807_s0 + $0x30] sm:$0xff]  ;;  %v223_v56 = vld [vmem:[%s807_s0 + $0x38] sm:$0xff]  ;;  %v224_v57 = vld [vmem:[%s670_s25] sm:$0xff] }
  0x2d   : > { %v225_v58 = vld [vmem:[%s670_s25 + $0x8] sm:$0xff]  ;;  %v398_v11 = vld [vmem:[%s665_s22] sm:$0xff]  ;;  %v400_v18 = vld [vmem:[%s665_s22 + $0x10] sm:$0xff] }
  0x2e   : > { %v399_v14 = vld [vmem:[%s665_s22 + $0x8] sm:$0xff] }
  0x2f   : > { %279 = vmatpush.xpose.msra.mxu0 %v244_v21  ;;  %308 = vmatpush.xpose.msra.mxu1 %v245_v22  ;;  %v401_v22 = vld [vmem:[%s665_s22 + $0x18] sm:$0xff] }
  0x30   : > { %344 = vmatpush.xpose.msra.mxu2 %v262_v23  ;;  %373 = vmatpush.xpose.msra.mxu3 %v263_v24  ;;  %v391_v23 = vld [vmem:[#allocation2 + $0x8] sm:$0xff] }
  0x33   : > { %280 = vmatpush.xpose.msra.mxu0 %v242_v25  ;;  %309 = vmatpush.xpose.msra.mxu1 %v243_v26  ;;  %v393_v26 = vld [vmem:[#allocation2 + $0x18] sm:$0xff] }
  0x34   : > { %345 = vmatpush.xpose.msra.mxu2 %v260_v27  ;;  %374 = vmatpush.xpose.msra.mxu3 %v261_v28 }
  0x37   : > { %281 = vmatpush.xpose.msra.mxu0 %v240_v29  ;;  %310 = vmatpush.xpose.msra.mxu1 %v241_v30  ;;  %v395_v29 = vld [vmem:[#allocation2 + $0x28] sm:$0xff] }
  0x38   : > { %346 = vmatpush.xpose.msra.mxu2 %v258_v31  ;;  %375 = vmatpush.xpose.msra.mxu3 %v259_v32  ;;  %v390_v32 = vld [vmem:[#allocation2] sm:$0xff] }
  0x3b   : > { %282 = vmatpush.xpose.msra.mxu0 %v238_v33  ;;  %311 = vmatpush.xpose.msra.mxu1 %v239_v34  ;;  %v397_v34 = vld [vmem:[#allocation2 + $0x38] sm:$0xff] }
  0x3c   : > { %347 = vmatpush.xpose.msra.mxu2 %v256_v35  ;;  %376 = vmatpush.xpose.msra.mxu3 %v257_v36 }
  0x3f   : > { %348 = vmatmul.f32.vlgmr.msra.gmra.mxu2 %v216_v37  ;;  %377 = vmatmul.f32.vlgmr.msra.gmra.mxu3 %v217_v38 }
  0x40   : > { %283 = vmatpush.xpose.msra.mxu0 %v236_v39  ;;  %312 = vmatpush.xpose.msra.mxu1 %v237_v40 }
  0x44   : > { %284 = vmatpush.xpose.msra.mxu0 %v234_v41  ;;  %313 = vmatpush.xpose.msra.mxu1 %v235_v42  ;;  %v394_v41 = vld [vmem:[#allocation2 + $0x20] sm:$0xff] }
  0x47   : > { %351 = vmatmul.f32.gmra.mxu2 %v218_v43  ;;  %380 = vmatmul.f32.gmra.mxu3 %v219_v44 }
  0x48   : > { %285 = vmatpush.xpose.msra.mxu0 %v232_v45  ;;  %314 = vmatpush.xpose.msra.mxu1 %v233_v46 }
  0x4c   : > { %286 = vmatpush.xpose.msra.mxu0 %v230_v47  ;;  %315 = vmatpush.xpose.msra.mxu1 %v231_v48 }
  0x4f   : > { %354 = vmatmul.f32.gmra.mxu2 %v220_v49  ;;  %383 = vmatmul.f32.gmra.mxu3 %v221_v50 }
  0x50   : > { %287 = vmatpush.xpose.msra.mxu0 %v228_v51  ;;  %316 = vmatpush.xpose.msra.mxu1 %v229_v52 }
  0x54   : > { %288 = vmatpush.xpose.msra.mxu0 %v226_v53  ;;  %317 = vmatpush.xpose.msra.mxu1 %v227_v54 }
  0x57   : > { %357 = vmatmul.f32.gmra.mxu2 %v222_v55  ;;  %386 = vmatmul.f32.gmra.mxu3 %v223_v56 }
  0x58   : > { %289 = vmatpush.xpose.msra.mxu0 %v224_v57  ;;  %318 = vmatpush.xpose.msra.mxu1 %v225_v58 }
  0x5b   : > { %290 = vmatmul.f32.vlgmr.msra.gmra.mxu0 %v216_v37  ;;  %319 = vmatmul.f32.vlgmr.msra.gmra.mxu1 %v217_v38  ;;  %v392_v38 = vld [vmem:[#allocation2 + $0x10] sm:$0xff] }
  0x63   : > { %293 = vmatmul.f32.gmra.mxu0 %v218_v43  ;;  %322 = vmatmul.f32.gmra.mxu1 %v219_v44  ;;  %v396_v44 = vld [vmem:[#allocation2 + $0x30] sm:$0xff] }
  0x6b   : > { %296 = vmatmul.f32.gmra.mxu0 %v220_v49  ;;  %325 = vmatmul.f32.gmra.mxu1 %v221_v50 }
  0x73   : > { %299 = vmatmul.f32.gmra.mxu0 %v222_v55  ;;  %328 = vmatmul.f32.gmra.mxu1 %v223_v56 }
  0xc2   : > { %v349_v59 = vpop.f32.mrf.mxu2  ;;  %v378_v60 = vpop.f32.mrf.mxu3 }
  0xc3   : > { %v379_v10 = vadd.f32 %v378_v60, %v349_v59 }
  0xca   : > { %v352_v61 = vpop.f32.mrf.mxu2  ;;  %v381_v62 = vpop.f32.mrf.mxu3 }
  0xcb   : > { %v382_v7 = vadd.f32 %v381_v62, %v352_v61 }
  0xd2   : > { %v355_v63 = vpop.f32.mrf.mxu2  ;;  %v384_v0 = vpop.f32.mrf.mxu3 }
  0xd3   : > { %v385_v5 = vadd.f32 %v384_v0, %v355_v63 }
  0xd8   : > { %v291_v1 = vpop.f32.mrf.mxu0  ;;  %v320_v2 = vpop.f32.mrf.mxu1 }
  0xd9   : > { %v321_v21 = vadd.f32 %v320_v2, %v291_v1 }
  0xda   : > { %v358_v3 = vpop.f32.mrf.mxu2  ;;  %v387_v4 = vpop.f32.mrf.mxu3 }
  0xdb   : > { %v388_v6 = vadd.f32 %v387_v4, %v358_v3 }
  0xdd   : > { %456 = vmatpush.msrb.mxu3 %v388_v6 }
  0xdf   : > { %457 = vmatpush.msrb.mxu3 %v385_v5 }
  0xe0   : > { %v294_v8 = vpop.f32.mrf.mxu0  ;;  %v323_v9 = vpop.f32.mrf.mxu1 }
  0xe1   : > { %458 = vmatpush.msrb.mxu3 %v382_v7  ;;  %v324_v20 = vadd.f32 %v323_v9, %v294_v8 }
  0xe3   : > { %459 = vmatpush.msrb.mxu3 %v379_v10 }
  0xe4   : > { %594 = vmatmul.msk.f32.vlgmr.msrb.gmra.mxu3 %vm402_vm1, %v398_v11 }
  0xe8   : > { %v297_v12 = vpop.f32.mrf.mxu0  ;;  %v326_v13 = vpop.f32.mrf.mxu1 }
  0xe9   : > { %v327_v19 = vadd.f32 %v326_v13, %v297_v12 }
  0xec   : > { %595 = vmatmul.msk.f32.gmra.mxu3 %vm402_vm1, %v399_v14 }
  0xf0   : > { %v300_v15 = vpop.f32.mrf.mxu0  ;;  %v329_v16 = vpop.f32.mrf.mxu1 }
  0xf1   : > { %v330_v17 = vadd.f32 %v329_v16, %v300_v15 }
  0xf3   : > { %427 = vmatpush.msrb.mxu2 %v330_v17 }
  0xf4   : > { %596 = vmatmul.msk.f32.gmra.mxu3 %vm402_vm1, %v400_v18 }
  0xf5   : > { %428 = vmatpush.msrb.mxu2 %v327_v19 }
  0xf7   : > { %429 = vmatpush.msrb.mxu2 %v324_v20 }
  0xf9   : > { %430 = vmatpush.msrb.mxu2 %v321_v21 }
  0xfa   : > { %590 = vmatmul.msk.f32.vlgmr.msrb.gmra.mxu2 %vm402_vm1, %v398_v11 }
  0xfc   : > { %597 = vmatmul.msk.f32.gmra.mxu3 %vm402_vm1, %v401_v22 }
 0x102   : > { %591 = vmatmul.msk.f32.gmra.mxu2 %vm402_vm1, %v399_v14 }
 0x10a   : > { %592 = vmatmul.msk.f32.gmra.mxu2 %vm402_vm1, %v400_v18 }
 0x112   : > { %593 = vmatmul.msk.f32.gmra.mxu2 %vm402_vm1, %v401_v22 }
 0x167   : > { %v461_v24 = vpop.f32.mrf.mxu3 }
 0x168   : > { %v474_v25 = vadd.f32 %v461_v24, %v391_v23 }
 0x16a   : > { %483 = vst.msk [vmem:[#allocation2 + $0x8] sm:$0xff] %vm482_vm2, %v474_v25 }
 0x16f   : > { %v464_v27 = vpop.f32.mrf.mxu3 }
 0x170   : > { %v476_v28 = vadd.f32 %v464_v27, %v393_v26 }
 0x172   : > { %485 = vst.msk [vmem:[#allocation2 + $0x18] sm:$0xff] %vm482_vm2, %v476_v28 }
 0x177   : > { %v467_v30 = vpop.f32.mrf.mxu3 }
 0x178   : > { %v478_v31 = vadd.f32 %v467_v30, %v395_v29 }
 0x17a   : > { %487 = vst.msk [vmem:[#allocation2 + $0x28] sm:$0xff] %vm482_vm2, %v478_v31 }
 0x17d   : > { %v432_v33 = vpop.f32.mrf.mxu2 }
 0x17e   : > { %v473_v35 = vadd.f32 %v432_v33, %v390_v32 }
 0x17f   : > { %v470_v36 = vpop.f32.mrf.mxu3 }
 0x180   : > { %481 = vst [vmem:[#allocation2] sm:$0xff] %v473_v35  ;;  %v480_v37 = vadd.f32 %v470_v36, %v397_v34 }
 0x182   : > { %489 = vst.msk [vmem:[#allocation2 + $0x38] sm:$0xff] %vm482_vm2, %v480_v37 }
 0x185   : > { %v435_v39 = vpop.f32.mrf.mxu2 }
 0x186   : > { %v475_v40 = vadd.f32 %v435_v39, %v392_v38 }
 0x188   : > { %484 = vst [vmem:[#allocation2 + $0x10] sm:$0xff] %v475_v40 }
 0x18d   : > { %v438_v42 = vpop.f32.mrf.mxu2 }
 0x18e   : > { %v477_v43 = vadd.f32 %v438_v42, %v394_v41 }
 0x190   : > { %486 = vst [vmem:[#allocation2 + $0x20] sm:$0xff] %v477_v43 }
 0x194   : > { %493 = sbr.rel (%p598_p5) target bundleno = 540 (0x21c), region = 44 }
 0x195   : > { %v441_v45 = vpop.f32.mrf.mxu2 }
 0x196   : > { %v479_v46 = vadd.f32 %v441_v45, %v396_v44 }
 0x198   : > { %488 = vst [vmem:[#allocation2 + $0x30] sm:$0xff] %v479_v46 }
 0x199   : > { %v504_v47 = vld [vmem:[%s810_s3 + $0x10] sm:$0xff]  ;;  %v502_v48 = vld [vmem:[%s810_s3] sm:$0xff]  ;;  %v624_v49 = vmov 0   ;;  %v505_v50 = vld [vmem:[%s810_s3 + $0x18] sm:$0xff] }
 0x19a   : > { %614 = vset.pattern.permute.xlu1 %v624_v49  ;;  %613 = vset.pattern.permute.xlu0 %v624_v49  ;;  %v503_v51 = vld [vmem:[%s810_s3 + $0x8] sm:$0xff]  ;;  %v498_v52 = vld [vmem:[#allocation2 + $0x20] sm:$0xff]  ;;  %v501_v63 = vld [vmem:[#allocation2 + $0x38] sm:$0xff] }
 0x19b   : > { %518 = vperm.xlu1 %614, %v504_v47   ;;  %508 = vperm.xlu0 %613, %v502_v48   ;;  %v499_v53 = vld [vmem:[#allocation2 + $0x28] sm:$0xff]  ;;  %v494_v54 = vld [vmem:[#allocation2] sm:$0xff]  ;;  %v496_v0 = vld [vmem:[#allocation2 + $0x10] sm:$0xff] }
 0x19c   : > { %v495_v55 = vld [vmem:[#allocation2 + $0x8] sm:$0xff]  ;;  %v497_v1 = vld [vmem:[#allocation2 + $0x18] sm:$0xff] }
 0x19f   : > { %v500_v62 = vld [vmem:[#allocation2 + $0x30] sm:$0xff] }
 0x1a3   : > { %523 = vperm.xlu1 %614, %v505_v50   ;;  %513 = vperm.xlu0 %613, %v503_v51  }
 0x20d   : > { %v519_v56 = vpop.permute.xlu1 %518  ;;  %v509_v57 = vpop.permute.xlu0 %508 }
 0x20e   : > { %v530_v58 = vadd.f32 %v519_v56, %v498_v52  ;;  %v531_v59 = vadd.f32 %v519_v56, %v499_v53  ;;  %v526_v60 = vadd.f32 %v509_v57, %v494_v54  ;;  %v527_v61 = vadd.f32 %v509_v57, %v495_v55 }
 0x210   : > { %538 = vst [vmem:[%s811_s4 + $0x20] sm:$0xff] %v530_v58 }
 0x211   : > { %539 = vst.msk [vmem:[%s811_s4 + $0x28] sm:$0xff] %vm482_vm2, %v531_v59 }
 0x212   : > { %534 = vst [vmem:[%s811_s4] sm:$0xff] %v526_v60 }
 0x213   : > { %535 = vst.msk [vmem:[%s811_s4 + $0x8] sm:$0xff] %vm482_vm2, %v527_v61 }
 0x215   : > { %v524_v2 = vpop.permute.xlu1 %523  ;;  %v514_v3 = vpop.permute.xlu0 %513 }
 0x216   : > { %v532_v4 = vadd.f32 %v524_v2, %v500_v62  ;;  %v533_v5 = vadd.f32 %v524_v2, %v501_v63  ;;  %v528_v6 = vadd.f32 %v514_v3, %v496_v0  ;;  %v529_v7 = vadd.f32 %v514_v3, %v497_v1 }
 0x218   : > { %540 = vst [vmem:[%s811_s4 + $0x30] sm:$0xff] %v532_v4 }
 0x219   : > { %541 = vst.msk [vmem:[%s811_s4 + $0x38] sm:$0xff] %vm482_vm2, %v533_v5 }
 0x21a   : > { %536 = vst [vmem:[%s811_s4 + $0x10] sm:$0xff] %v528_v6 }
 0x21b   : > { %537 = vst.msk [vmem:[%s811_s4 + $0x18] sm:$0xff] %vm482_vm2, %v529_v7 }
 0x21c PF: > { %s14_s15 = sadd.s32 1, %s621_s15  }
 0x21d   : > { %p11_p6 = scmp.ge.s32.totalorder %s14_s15, 10  }
 0x21f   :  { %13 = sbr.rel (!%p11_p6) target bundleno = 1 (0x1), region = 73 }

</bundles_post_ra>
